<compile_context>
chip_gen: v6e
topology: v6e:2x2x1
jax: 0.10.0
libtpu: 0.0.40
codegen_flags: <defaults>
</compile_context>

<pallas_src>
import functools
import math

import jax
import jax.numpy as jnp
from jax import lax
from jax.experimental import pallas as pl
from jax.experimental.pallas import tpu as pltpu

LN_EPS = 1e-5  # nn.LayerNorm default


def _round_up(x, m):
    return ((x + m - 1) // m) * m


def prenorm_kernel(x_ref, gamma_ref, beta_ref, w_ref, fb_ref, o_ref,
                   normed_ref, *, d_valid):
    """One (row-tile i, col-tile j) grid step of fused LayerNorm -> Linear.

    The LayerNorm is computed once per row tile (at j == 0) into a bf16 VMEM
    scratch and reused for every output-column tile.  Dp may be a padded
    (128-multiple) feature dim; `d_valid` is the true dim.  Padded columns of
    x/gamma/beta/fn_bias and padded rows/cols of w are zero.
    """
    @pl.when(pl.program_id(1) == 0)
    def _():
        x = x_ref[...].astype(jnp.float32)                    # (tm, Dp)
        tm, dp = x.shape
        # LayerNorm over the true feature width (biased variance, torch).
        if d_valid == dp:
            mean = jnp.mean(x, axis=-1, keepdims=True)
            xc = x - mean
            var = jnp.mean(xc * xc, axis=-1, keepdims=True)
        else:
            col = lax.broadcasted_iota(jnp.int32, (tm, dp), 1)
            valid = col < d_valid
            inv_d = 1.0 / float(d_valid)
            mean = jnp.sum(x, axis=-1, keepdims=True) * inv_d  # pad cols are 0
            xc = jnp.where(valid, x - mean, 0.0)
            var = jnp.sum(xc * xc, axis=-1, keepdims=True) * inv_d
        inv = lax.rsqrt(var + LN_EPS)
        normed = xc * inv * gamma_ref[...] + beta_ref[...]     # pad gamma/beta=0
        normed_ref[...] = normed.astype(normed_ref.dtype)      # bf16 for the MXU

    # fn: Linear(dim, dim) column tile on the MXU, bf16 operands + f32 acc.
    y = jnp.dot(normed_ref[...], w_ref[...], preferred_element_type=jnp.float32)
    o_ref[...] = (y + fb_ref[...]).astype(o_ref.dtype)


def prenorm_prepare(gamma, beta, w, fn_bias):
    """One-time parameter packing: pad to a lane-dense 128-multiple feature
    dim and cast the Linear weight to bf16 for the MXU (do NOT redo per call)."""
    D = gamma.shape[-1]
    Dp = _round_up(D, 128)
    pad = Dp - D
    return dict(
        D=D, Dp=Dp,
        gamma=jnp.pad(gamma.astype(jnp.float32), (0, pad)).reshape(1, Dp),
        beta=jnp.pad(beta.astype(jnp.float32), (0, pad)).reshape(1, Dp),
        fb=jnp.pad(fn_bias.astype(jnp.float32), (0, pad)).reshape(1, Dp),
        # (in, out) layout, y = x @ W.  (PyTorch nn.Linear stores (out, in);
        # transpose real checkpoints before passing them in.)
        w=jnp.pad(w, ((0, pad), (0, pad))).astype(jnp.bfloat16),
    )


def prenorm_apply(x, params, *, tile_rows=512, tile_cols=512):
    """x: (..., D) in its original dtype.  Returns fn(LayerNorm(x)), fn = Linear(D, D)."""
    D, Dp = params["D"], params["Dp"]
    orig_dtype = x.dtype
    lead = x.shape[:-1]
    rows = math.prod(lead) if lead else 1

    x2 = x.reshape(rows, D)
    if Dp != D:  # only when D is not already a multiple of 128
        x2 = jnp.pad(x2, ((0, 0), (0, Dp - D)))

    xbytes = x2.dtype.itemsize
    obytes = jnp.dtype(orig_dtype).itemsize

    # Column tile: keep the whole bf16 weight resident while its double-
    # buffered footprint is small; tile output columns for large D (v7x VMEM).
    if 2 * Dp * Dp * 2 <= (16 << 20):
        tn = Dp
    else:
        tn = max(128, (min(tile_cols, Dp) // 128) * 128)

    # Row tile: at least 2 row-grid steps when possible (v7x has 2 TCs and the
    # row axis is "parallel"), multiple of 8, shrunk to fit the VMEM budget.
    tm = min(tile_rows, _round_up(pl.cdiv(rows, 2), 8))
    tm = _round_up(max(tm, 8), 8)

    def _vmem_need(tm_):
        return (2 * tm_ * Dp * xbytes        # x tile (double-buffered)
                + tm_ * Dp * 2               # normed bf16 scratch
                + 2 * Dp * tn * 2            # bf16 weight tile (double-buffered)
                + 2 * tm_ * tn * obytes      # output tile (double-buffered)
                + 6 * Dp * 4)                # gamma / beta / bias

    budget = 48 << 20                        # stay well under v7x's 64 MiB VMEM
    while _vmem_need(tm) > budget and tm > 64:
        tm = _round_up(max(tm // 2, 8), 8)
    vmem_limit = int(max(_vmem_need(tm) + (4 << 20), 32 << 20))

    grid = (pl.cdiv(rows, tm), pl.cdiv(Dp, tn))

    cost = pl.CostEstimate(
        flops=2 * rows * Dp * Dp,
        transcendentals=rows,
        bytes_accessed=rows * Dp * (xbytes + obytes)   # x in + out back (orig dtype)
                       + grid[0] * Dp * Dp * 2         # bf16 weight per row tile
                       + 3 * Dp * 4,
    )

    kern = functools.partial(prenorm_kernel, d_valid=D)

    out = pl.pallas_call(
        kern,
        out_shape=jax.ShapeDtypeStruct((rows, Dp), orig_dtype),
        grid_spec=pltpu.PrefetchScalarGridSpec(
            num_scalar_prefetch=0,
            grid=grid,
            in_specs=[
                pl.BlockSpec((tm, Dp), lambda i, j: (i, 0)),   # x rows (1 DMA per i)
                pl.BlockSpec((1, Dp), lambda i, j: (0, 0)),    # gamma
                pl.BlockSpec((1, Dp), lambda i, j: (0, 0)),    # beta
                pl.BlockSpec((Dp, tn), lambda i, j: (0, j)),   # bf16 weight col tile
                pl.BlockSpec((1, tn), lambda i, j: (0, j)),    # fn bias col tile
            ],
            out_specs=pl.BlockSpec((tm, tn), lambda i, j: (i, j)),
            scratch_shapes=[pltpu.VMEM((tm, Dp), jnp.bfloat16)],  # normed cache
        ),
        compiler_params=pltpu.CompilerParams(
            dimension_semantics=("parallel", "arbitrary"),
            vmem_limit_bytes=vmem_limit,
        ),
        cost_estimate=cost,
    )(x2, params["gamma"], params["beta"], params["w"], params["fb"])

    if Dp != D:
        out = out[:, :D]
    return out.reshape(*lead, D)


def prenorm(x, gamma, beta, w, fn_bias, *, tile_rows=512, tile_cols=512):
    """Convenience wrapper: pack params then apply (pack once in real use)."""
    params = prenorm_prepare(gamma, beta, w, fn_bias)
    return prenorm_apply(x, params, tile_rows=tile_rows, tile_cols=tile_cols)


def reference(x, gamma, beta, w, fn_bias):
    xf = x.astype(jnp.float32)
    mean = jnp.mean(xf, axis=-1, keepdims=True)
    var = jnp.mean((xf - mean) ** 2, axis=-1, keepdims=True)
    normed = (xf - mean) / jnp.sqrt(var + LN_EPS) * gamma + beta
    return (jnp.einsum("...d,de->...e", normed, w) + fn_bias).astype(x.dtype)


if __name__ == "__main__":
    B, S, D = 2, 8, 32
    key = jax.random.PRNGKey(0)
    kx, kw, kb = jax.random.split(key, 3)

    x = jax.random.normal(kx, (B, S, D), dtype=jnp.float32)

    # LayerNorm params: PyTorch default init (weight=1, bias=0).
    gamma = jnp.ones((D,), dtype=jnp.float32)
    beta = jnp.zeros((D,), dtype=jnp.float32)

    # fn = Linear(D, D): deterministic synthetic params ((in, out) layout).
    w = jax.random.normal(kw, (D, D), dtype=jnp.float32) * (1.0 / jnp.sqrt(D))
    fn_bias = jax.random.normal(kb, (D,), dtype=jnp.float32) * 0.01

    out = prenorm(x, gamma, beta, w, fn_bias)
    jax.block_until_ready(out)

    ref = reference(x, gamma, beta, w, fn_bias)
    assert out.shape == (B, S, D)
    # bf16 MXU operands -> loosened tolerance (LayerNorm stats stay f32).
    assert jnp.allclose(out, ref, atol=5e-2, rtol=5e-2)

    print("KERNEL_OK")
</pallas_src>

<mosaic_0001>
module attributes {stable_mosaic.version = 11 : i64} {
  func.func @prenorm_kernel(%arg0: i32, %arg1: i32, %arg2: memref<8x128xf32, #tpu.memory_space<vmem>>, %arg3: memref<1x128xf32, #tpu.memory_space<vmem>>, %arg4: memref<1x128xf32, #tpu.memory_space<vmem>>, %arg5: memref<128x128xbf16, #tpu.memory_space<vmem>>, %arg6: memref<1x128xf32, #tpu.memory_space<vmem>>, %arg7: memref<8x128xf32, #tpu.memory_space<vmem>>, %arg8: memref<8x128xbf16, #tpu.memory_space<vmem>>) attributes {dimension_semantics = [#tpu.dimension_semantics<parallel>, #tpu.dimension_semantics<arbitrary>], iteration_bounds = array<i64: 2, 1>, scalar_prefetch = 0 : i64, scratch_operands = 1 : i64, tpu.core_type = #tpu.core_type<tc>, window_params = [{transform_indices = @transform_0, window_bounds = array<i64: 8, 128>}, {pipeline_mode = #tpu.pipeline_mode<synchronous>, transform_indices = @transform_1, window_bounds = array<i64: 1, 128>}, {pipeline_mode = #tpu.pipeline_mode<synchronous>, transform_indices = @transform_2, window_bounds = array<i64: 1, 128>}, {transform_indices = @transform_3, window_bounds = array<i64: 128, 128>}, {transform_indices = @transform_4, window_bounds = array<i64: 1, 128>}, {transform_indices = @transform_5, window_bounds = array<i64: 8, 128>}]} {
    %c0_i32 = arith.constant 0 : i32
    %0 = arith.cmpi eq, %arg1, %c0_i32 : i32
    %1 = arith.extui %0 : i1 to i32
    %c0_i32_0 = arith.constant 0 : i32
    %2 = arith.cmpi ne, %1, %c0_i32_0 : i32
    scf.if %2 {
      %c0_8 = arith.constant 0 : index
      %c0_9 = arith.constant 0 : index
      %10 = vector.load %arg2[%c0_8, %c0_9] : memref<8x128xf32, #tpu.memory_space<vmem>>, vector<8x128xf32>
      %11 = tpu.iota {dimensions = array<i32: 1>} : vector<8x128xi32>
      %c32_i32 = arith.constant 32 : i32
      %12 = vector.broadcast %c32_i32 : i32 to vector<8x128xi32>
      %13 = arith.cmpi slt, %11, %12 : vector<8x128xi32>
      %cst_10 = arith.constant dense<0.000000e+00> : vector<8xf32>
      %14 = vector.multi_reduction <add>, %10, %cst_10 [1] : vector<8x128xf32> to vector<8xf32>
      %15 = vector.shape_cast %14 : vector<8xf32> to vector<8x1xf32>
      %cst_11 = arith.constant 3.125000e-02 : f32
      %16 = vector.broadcast %cst_11 : f32 to vector<8x1xf32>
      %17 = arith.mulf %15, %16 : vector<8x1xf32>
      %18 = vector.broadcast %17 : vector<8x1xf32> to vector<8x128xf32>
      %19 = arith.subf %10, %18 : vector<8x128xf32>
      %cst_12 = arith.constant 0.000000e+00 : f32
      %20 = vector.broadcast %cst_12 : f32 to vector<8x128xf32>
      %21 = arith.select %13, %19, %20 : vector<8x128xi1>, vector<8x128xf32>
      %22 = arith.mulf %21, %21 : vector<8x128xf32>
      %cst_13 = arith.constant dense<0.000000e+00> : vector<8xf32>
      %23 = vector.multi_reduction <add>, %22, %cst_13 [1] : vector<8x128xf32> to vector<8xf32>
      %24 = vector.shape_cast %23 : vector<8xf32> to vector<8x1xf32>
      %cst_14 = arith.constant 3.125000e-02 : f32
      %25 = vector.broadcast %cst_14 : f32 to vector<8x1xf32>
      %26 = arith.mulf %24, %25 : vector<8x1xf32>
      %cst_15 = arith.constant 9.99999974E-6 : f32
      %27 = vector.broadcast %cst_15 : f32 to vector<8x1xf32>
      %28 = arith.addf %26, %27 : vector<8x1xf32>
      %29 = math.rsqrt %28 : vector<8x1xf32>
      %30 = vector.broadcast %29 : vector<8x1xf32> to vector<8x128xf32>
      %31 = arith.mulf %21, %30 : vector<8x128xf32>
      %c0_16 = arith.constant 0 : index
      %c0_17 = arith.constant 0 : index
      %32 = vector.load %arg3[%c0_16, %c0_17] : memref<1x128xf32, #tpu.memory_space<vmem>>, vector<1x128xf32>
      %33 = vector.broadcast %32 : vector<1x128xf32> to vector<8x128xf32>
      %34 = arith.mulf %31, %33 : vector<8x128xf32>
      %c0_18 = arith.constant 0 : index
      %c0_19 = arith.constant 0 : index
      %35 = vector.load %arg4[%c0_18, %c0_19] : memref<1x128xf32, #tpu.memory_space<vmem>>, vector<1x128xf32>
      %36 = vector.broadcast %35 : vector<1x128xf32> to vector<8x128xf32>
      %37 = arith.addf %34, %36 : vector<8x128xf32>
      %38 = arith.truncf %37 : vector<8x128xf32> to vector<8x128xbf16>
      %c0_20 = arith.constant 0 : index
      %c0_21 = arith.constant 0 : index
      %39 = vector.load %arg8[%c0_20, %c0_21] : memref<8x128xbf16, #tpu.memory_space<vmem>>, vector<8x128xbf16>
      tpu.vector_store %arg8[%c0_20, %c0_21], %38 {strides = array<i32>} : memref<8x128xbf16, #tpu.memory_space<vmem>>, vector<8x128xbf16>,
    } else {
    }
    %c0 = arith.constant 0 : index
    %c0_1 = arith.constant 0 : index
    %3 = vector.load %arg8[%c0, %c0_1] : memref<8x128xbf16, #tpu.memory_space<vmem>>, vector<8x128xbf16>
    %c0_2 = arith.constant 0 : index
    %c0_3 = arith.constant 0 : index
    %4 = vector.load %arg5[%c0_2, %c0_3] : memref<128x128xbf16, #tpu.memory_space<vmem>>, vector<128x128xbf16>
    %cst = arith.constant dense<0.000000e+00> : vector<8x128xf32>
    %5 = tpu.matmul %3, %4, %cst {dimension_numbers = #tpu.dot_dimension_numbers<[1], [0], [0], [1], [0, 0, 1, 1], [], []>} : vector<8x128xbf16>, vector<128x128xbf16>, vector<8x128xf32> -> vector<8x128xf32>
    %c0_4 = arith.constant 0 : index
    %c0_5 = arith.constant 0 : index
    %6 = vector.load %arg6[%c0_4, %c0_5] : memref<1x128xf32, #tpu.memory_space<vmem>>, vector<1x128xf32>
    %7 = vector.broadcast %6 : vector<1x128xf32> to vector<8x128xf32>
    %8 = arith.addf %5, %7 : vector<8x128xf32>
    %c0_6 = arith.constant 0 : index
    %c0_7 = arith.constant 0 : index
    %9 = vector.load %arg7[%c0_6, %c0_7] : memref<8x128xf32, #tpu.memory_space<vmem>>, vector<8x128xf32>
    tpu.vector_store %arg7[%c0_6, %c0_7], %8 {strides = array<i32>} : memref<8x128xf32, #tpu.memory_space<vmem>>, vector<8x128xf32>,
    return
  }
  func.func @transform_0(%arg0: i32, %arg1: i32) -> (i32, i32) {
    %c0_i32 = arith.constant 0 : i32
    %c0_i32_0 = arith.constant 0 : i32
    return %arg0, %c0_i32 : i32, i32
  }
  func.func @transform_1(%arg0: i32, %arg1: i32) -> (i32, i32) {
    %c0_i32 = arith.constant 0 : i32
    %c0_i32_0 = arith.constant 0 : i32
    %c0_i32_1 = arith.constant 0 : i32
    return %c0_i32, %c0_i32_0 : i32, i32
  }
  func.func @transform_2(%arg0: i32, %arg1: i32) -> (i32, i32) {
    %c0_i32 = arith.constant 0 : i32
    %c0_i32_0 = arith.constant 0 : i32
    %c0_i32_1 = arith.constant 0 : i32
    return %c0_i32, %c0_i32_0 : i32, i32
  }
  func.func @transform_3(%arg0: i32, %arg1: i32) -> (i32, i32) {
    %c0_i32 = arith.constant 0 : i32
    %c0_i32_0 = arith.constant 0 : i32
    return %c0_i32, %arg1 : i32, i32
  }
  func.func @transform_4(%arg0: i32, %arg1: i32) -> (i32, i32) {
    %c0_i32 = arith.constant 0 : i32
    %c0_i32_0 = arith.constant 0 : i32
    return %c0_i32, %arg1 : i32, i32
  }
  func.func @transform_5(%arg0: i32, %arg1: i32) -> (i32, i32) {
    %c0_i32 = arith.constant 0 : i32
    return %arg0, %arg1 : i32, i32
  }
}

</mosaic_0001>

<bundles_post_ra>
// kernel: tpu_custom_call.1
= control target key start
LH: loop header
LB: loop body
LE: loop exit
PB: predicated region body
PF: predicated region fallthrough
CT: control target
= control target key end

     0   :  { %s1072_s0 = inlined_call_operand.hbm [shape: f32[16,128], index: 0, kind: input, shape index: {}]   ;;  %s1073_s1 = inlined_call_operand.vmem [shape: f32[1,128], index: 1, kind: input, shape index: {}]   ;;  %s1074_s2 = inlined_call_operand.vmem [shape: f32[1,128], index: 2, kind: input, shape index: {}]   ;;  %s1075_s3 = inlined_call_operand.hbm [shape: bf16[128,128], index: 3, kind: input, shape index: {}]   ;;  %s1076_s4 = inlined_call_operand.vmem [shape: f32[1,128], index: 4, kind: input, shape index: {}]   ;;  %s1077_s5 = inlined_call_operand.hbm [shape: f32[16,128], index: 5, kind: output, shape index: {}]  }
   0x1   :  { %1080 = sst [smem:[#allocation13_spill]] %s1075_s3 }
   0x2   :  { %10 = vsyncpa [#allocation4], 0 }
   0x3   :  { %12 = vsyncpa [#allocation4 + $0x1], 0 }
   0x4   :  { %13 = vsyncpa [#allocation7], 0 }
   0x5   :  { %14 = vsyncpa [#allocation5], 0 }
   0x6   :  { %16 = vsyncpa [#allocation5 + $0x1], 0  ;;  %s880_s18 = smov 0   ;;  %s882_s19 = smov 0  }
   0x7   :  { %s884_s20 = smov 0   ;;  %s886_s21 = smov 0  }
   0x8   :  { %s888_s22 = smov 0   ;;  %s890_s23 = smov 0  }
   0x9 LB: > { %s560_s24 = sadd.s32 4294967295, %s841_s23   ;;  %s561_s25 = sadd.s32 4294967294, %s841_s23   ;;  %s841_s23 = sphi %s890_s23, %s22_s23   ;;  %s837_s22 = sphi %s888_s22, %s1100_s22   ;;  %s833_s21 = sphi %s886_s21, %s1099_s21   ;;  %s829_s20 = sphi %s884_s20, %s1098_s20   ;;  %s825_s19 = sphi %s882_s19, %s1097_s19   ;;  %s821_s18 = sphi %s880_s18, %s1096_s18  }
   0xa   : > { %p54_p0 = scmp.ne.s32.totalorder %s825_s19, %s821_s18  ;;  %p914_p1 = scmp.eq.s32.totalorder %s560_s24, 0 }
   0xb   : > { %p918_p2 = scmp.eq.s32.totalorder %s560_s24, 1  ;;  %p180_p3 = scmp.eq.s32.totalorder %s561_s25, 1 }
   0xc   : > { %p924_p4 = por %p914_p1, %p54_p0  ;;  %p562_p5 = scmp.ge.s32.totalorder %s841_s23, 1 }
   0xd   : > { %p929_p6 = por %p180_p3, %p54_p0  ;;  %p187_p7 = scmp.lt.s32.totalorder %s841_s23, 3 }
   0xe   : > { %s1083_s28 = scalar_select %p924_p4, 1, 0 }
   0xf   : > { %s1084_s29 = scalar_select %p929_p6, 1, 0 }
  0x10   : > { %p934_p8 = pnand %p562_p5, %p187_p7  ;;  %s843_s6 = smov [#allocation6]  }
  0x11   : > { %s207_s7 = sshll.u32 %s843_s6, 4  ;;  %s34_s9 = sadd.s32 1, %s837_s22  ;;  %s208_s7 = int_to_ptr.vmem [resolvable:$true] %s207_s7 }
  0x12   : > { %p624_p9 = pneg %p934_p8  ;;  %s714_s10 = scalar_lea.vmem %s208_s7, 1024 }
  0x13   : > { %p715_p13 = scmp.ne.s32.totalorder %s208_s7, %s714_s10  ;;  %p722_p5 = scmp.lt.s32.totalorder %s208_s7, %s208_s7 }
  0x14   : > { %p943_p11 = pnand %p624_p9, %p914_p1  ;;  %p723_p7 = scmp.lt.s32.totalorder %s714_s10, %s714_s10 }
  0x16   : > { %p705_p12 = pneg %p943_p11  ;;  %p724_p6 = por %p723_p7, %p722_p5 }
  0x18   : > { %p717_p0 = pnand %p715_p13, %p705_p12 }
  0x1a   : > { %p718_p3 = pneg %p717_p0 }
  0x1c   : > { %p725_p4 = pnand %p724_p6, %p718_p3 }
  0x1e   : > { %728 = shalt.err (!%p725_p4)
}
  0x1f   : > { %s844_s11 = smov 64   ;;  %s845_s12 = smov 4  }
  0x20   : > { %s1087_s3 = sld [smem:[#allocation13_spill]]  ;;  %p36_p6 = scmp.ge.s32.totalorder %s34_s9, 2 }
  0x21   : > { %s41_s15 = sadd.s32 1, %s829_s20  ;;  %p48_p4 = scmp.ne.s32.totalorder %s829_s20, %s825_s19 }
  0x22   : > { %p49_p9 = scmp.eq.s32.totalorder %s841_s23, 0  ;;  %s1102_s9 = smov (%p36_p6, %s34_s9), 0 }
  0x23   : > { %1088 = sst [smem:[#allocation12_spill]] %s1102_s9  ;;  %p967_p13 = por %p918_p2, %p48_p4 }
  0x24   : > { %p961_p12 = por %p49_p9, %p48_p4  ;;  %s38_s24 = ssub.s32 %s837_s22, %s1102_s9 }
  0x25   : > { %p637_p0 = scmp.lt.s32.totalorder %s841_s23, 2  ;;  %s227_s25 = sand.u32 1, %s829_s20  }
  0x26   : > { %627 = dma.hbm_to_vmem [thread:$0]  (!%p943_p11), %s1087_s3, 1024, %s208_s7, [#allocation7], %s844_s11, %s844_s11, %s845_s12  }
  0x27   : > { %p39_p11 = scmp.eq.s32.totalorder %s38_s24, 0  ;;  %s566_s6 = sshll.u32 %s227_s25, 3 }
  0x28   : > { %s567_s8 = sshll.u32 %s837_s22, 7  ;;  %s231_s13 = scalar_lea.vmem [#allocation3], %s566_s6 }
  0x29   : > { %s976_s7 = scalar_select %p39_p11, %s829_s20, %s41_s15  }
  0x2a   : > { %s236_s12 = scalar_lea.hbm %s1072_s0, %s567_s8  ;;  %s238_s14 = sshll.u32 %s231_s13, 4  ;;  %s239_s14 = int_to_ptr.vmem [resolvable:$true] %s238_s14 }
  0x2b   : > { %p984_p2 = pnand %p637_p0, %p961_p12  ;;  %s228_s3 = scalar_lea.sflag [#allocation4], %s227_s25 }
  0x2c   : > { %s742_s24 = scalar_lea.vmem %s239_s14, 128  ;;  %s846_s15 = smov [#allocation3]  }
  0x2d   : > { %p731_p3 = pneg %p984_p2  ;;  %p743_p5 = scmp.ne.s32.totalorder %s239_s14, %s742_s24 }
  0x2e   : > { %s747_s9 = sshll.u32 %s846_s15, 4  ;;  %s748_s9 = int_to_ptr.vmem [resolvable:$false] %s747_s9 }
  0x2f   : > { %p745_p7 = pnand %p743_p5, %p731_p3  ;;  %s749_s8 = scalar_lea.vmem %s748_s9, 256 }
  0x30   : > { %p750_p4 = scmp.lt.s32.totalorder %s239_s14, %s748_s9  ;;  %p751_p9 = scmp.lt.s32.totalorder %s749_s8, %s742_s24 }
  0x31   : > { %p746_p6 = pneg %p745_p7 }
  0x32   : > { %p752_p11 = por %p751_p9, %p750_p4 }
  0x34   : > { %p753_p10 = pnand %p752_p11, %p746_p6 }
  0x36   : > { %756 = shalt.err (!%p753_p10)
}
  0x37   : > { %631 = dma.hbm_to_vmem [thread:$0]  (!%p984_p2), %s236_s12, 128, %s239_s14, %s228_s3  }
  0x38   : > { %247 = sbr.rel (%p934_p8) target bundleno = 591 (0x24f), region = 40  ;;  %s995_s16 = sand.u32 (!%p934_p8), 1, %s825_s19  }
  0x39   : > { %s569_s25 = sshll.u32 (!%p934_p8), %s995_s16, 3  ;;  %s250_s6 = scalar_lea.sflag (!%p934_p8), [#allocation4], %s995_s16 }
  0x3a   : > { %s253_s9 = scalar_lea.vmem (!%p934_p8), [#allocation3], %s569_s25  ;;  %p1092_p12 = scmp.ne.s32.totalorder (!%p934_p8), %s1083_s28, 0 }
  0x3d   : > { %808 = dma.done.wait (%p1092_p12), %s250_s6, 128  }
  0x3e   : > { %810 = vsyncadd (%p1092_p12), %s250_s6, 4294967168 }
  0x3f   : > { %812 = dma.done.wait (%p914_p1), [#allocation7], 1024  }
  0x40   : > { %814 = vsyncadd (%p914_p1), [#allocation7], 4294966272  ;;  %v295_v0 = vld [vmem:[%s253_s9] sm:$0xff]  ;;  %v296_v1 = vlaneseq  ;;  %v847_v9 = vmov 0.0   ;;  %v695_v11 = vld [vmem:[#allocation6 + $0x28] sm:$0xff]   ;;  %vm848_vm1 = vmmov 0  }
  0x41   : > { %299 = vadd.xlane.f32.xlu0 %v295_v0  ;;  %v693_v8 = vld [vmem:[#allocation6 + $0x38] sm:$0xff]   ;;  %596 = vmatprep.subr.bf16.mxu0 %v847_v9  ;;  %v694_v10 = vld [vmem:[#allocation6 + $0x30] sm:$0xff]   ;;  %v696_v12 = vld [vmem:[#allocation6 + $0x20] sm:$0xff]   ;;  %s584_s12 = sshll.u32 %s833_s21, 7  ;;  %s286_s13 = scalar_lea.vmem [#allocation8], %s569_s25 }
  0x42   : > { %v297_v2 = vand.u32 127, %v296_v1  ;;  %597 = vmatpush3.bf16.msra.mxu0 %v693_v8  ;;  %v697_v13 = vld [vmem:[#allocation6 + $0x18] sm:$0xff]   ;;  %v698_v14 = vld [vmem:[#allocation6 + $0x10] sm:$0xff]   ;;  %v699_v15 = vld [vmem:[#allocation6 + $0x8] sm:$0xff]   ;;  %612 = vmatprep.mubr.msk.bf16.mxu0 %vm848_vm1, %v847_v9  ;;  %s457_s14 = sshll.u32 %s286_s13, 4  ;;  %s1024_s15 = scalar_lea.hbm %s1077_s5, %s584_s12  ;;  %s1026_s14 = int_to_ptr.vmem [resolvable:$true] %s457_s14 }
  0x43   : > { %598 = vmatprep.subr.bf16.mxu0 %v847_v9  ;;  %v700_v16 = vld [vmem:[#allocation6] sm:$0xff]   ;;  %v572_v21 = vld [vmem:[%s1073_s1] ss:$0 sm:$0xff]  ;;  %s443_s8 = scalar_lea.sflag [#allocation5], %s995_s16  ;;  %s757_s21 = scalar_lea.vmem %s1026_s14, 128 }
  0x44   : > { %vm298_vm0 = vcmp.lt.s32.totalorder %v297_v2, 32  ;;  %v573_v23 = vld [vmem:[%s1074_s2] ss:$0 sm:$0xff]  ;;  %p758_p1 = scmp.ne.s32.totalorder %s1026_s14, %s757_s21  ;;  %s849_s25 = smov [#allocation8]  }
  0x45   : > { %v574_v28 = vld [vmem:[%s1076_s4] ss:$0 sm:$0xff]  ;;  %s761_s6 = sshll.u32 %s849_s25, 4  ;;  %s762_s6 = int_to_ptr.vmem [resolvable:$false] %s761_s6 }
  0x46   : > { %599 = vmatpush3.bf16.msra.mxu0 %v694_v10  ;;  %p759_p8 = pnand %p758_p1, %p967_p13  ;;  %s763_s9 = scalar_lea.vmem %s762_s6, 256 }
  0x47   : > { %600 = vmatprep.subr.bf16.mxu0 %v847_v9  ;;  %p764_p0 = scmp.lt.s32.totalorder %s1026_s14, %s762_s6  ;;  %p765_p2 = scmp.lt.s32.totalorder %s763_s9, %s757_s21 }
  0x48   : > { %p760_p10 = pneg %p759_p8 }
  0x49   : > { %p766_p3 = por %p765_p2, %p764_p0 }
  0x4a   : > { %601 = vmatpush3.bf16.msra.mxu0 %v695_v11 }
  0x4b   : > { %602 = vmatprep.subr.bf16.mxu0 %v847_v9  ;;  %p767_p5 = pnand %p766_p3, %p760_p10 }
  0x4e   : > { %603 = vmatpush3.bf16.msra.mxu0 %v696_v12 }
  0x4f   : > { %604 = vmatprep.subr.bf16.mxu0 %v847_v9 }
  0x52   : > { %605 = vmatpush3.bf16.msra.mxu0 %v697_v13 }
  0x53   : > { %606 = vmatprep.subr.bf16.mxu0 %v847_v9 }
  0x56   : > { %607 = vmatpush3.bf16.msra.mxu0 %v698_v14 }
  0x57   : > { %608 = vmatprep.subr.bf16.mxu0 %v847_v9 }
  0x5a   : > { %609 = vmatpush3.bf16.msra.mxu0 %v699_v15 }
  0x5b   : > { %610 = vmatprep.subr.bf16.mxu0 %v847_v9 }
  0x5e   : > { %611 = vmatpush3.bf16.msra.mxu0 %v700_v16 }
  0xca   : > { %v300_v3 = vpop.xlane.xlu0 %299 }
  0xcb   : > { %v301_v4 = vmul.f32 0.03125, %v300_v3 }
  0xcd   : > { %v302_v5 = vsub.f32 %v295_v0, %v301_v4 }
  0xcf   : > { %v303_v6 = vsel %vm298_vm0, %v302_v5, 0.0 }
  0xd0   : > { %v304_v7 = vmul.f32 %v303_v6, %v303_v6 }
  0xd2   : > { %305 = vadd.xlane.f32.xlu0 %v304_v7 }
 0x15b   : > { %v306_v17 = vpop.xlane.xlu0 %305 }
 0x15c   : > { %v307_v18 = vmul.f32 0.03125, %v306_v17 }
 0x15e   : > { %v308_v19 = vadd.f32 1e-05, %v307_v18 }
 0x160   : > { %701 = vrsqrt.f32 %v308_v19 }
 0x16d   : > { %v702_v20 = vpop.eup %701 }
 0x16e   : > { %v310_v22 = vmul.f32 %v702_v20, %v303_v6 }
 0x170   : > { %v318_v24 = vmul.f32 %v572_v21, %v310_v22 }
 0x172   : > { %v326_v25 = vadd.f32 %v573_v23, %v318_v24 }
 0x174   : > { %v327_v26 = vpack.c.bf16 %v326_v25, %v326_v25 }
 0x176   : > { %328 = vst [vmem:[#allocation2] sm:$0xf] %v327_v26 }
 0x17d   : > { %v329_v27 = vld [vmem:[#allocation2] sm:$0xf] }
 0x17e   : > { %613 = vmatmul.mubr.bf16.vlgmr.msra.gmra.mxu0 %v329_v27 }
 0x23e   : > { %v435_v29 = vpop.f32.mrf.mxu0 }
 0x23f   : > { %v436_v30 = vadd.f32 %v574_v28, %v435_v29 }
 0x240   : > { %v614_v31 = vpop.f32.mrf.mxu0 }
 0x241   : > { %441 = vst [vmem:[%s286_s13] sm:$0xff] %v436_v30 }
 0x242   : > { %v438_v32 = vpop.f32.mrf.mxu0 }
 0x243   : > { %770 = shalt.err (!%p767_p5)
}
 0x244   : > { %s771_s3 = scalar_lea.hbm %s1024_s15, 128  ;;  %s775_s28 = scalar_lea.hbm %s1077_s5, 256 }
 0x245   : > { %p772_p7 = scmp.ne.s32.totalorder %s1024_s15, %s771_s3  ;;  %p776_p9 = scmp.lt.s32.totalorder %s1024_s15, %s1077_s5 }
 0x246   : > { %p777_p11 = scmp.lt.s32.totalorder %s775_s28, %s771_s3 }
 0x247   : > { %p773_p6 = pnand %p772_p7, %p967_p13 }
 0x248   : > { %p778_p12 = por %p777_p11, %p776_p9 }
 0x249   : > { %p774_p4 = pneg %p773_p6 }
 0x24b   : > { %p779_p1 = pnand %p778_p12, %p774_p4 }
 0x24d   : > { %782 = shalt.err (!%p779_p1)
}
 0x24e   : > { %622 = dma.vmem_to_hbm [thread:$0]  (%p967_p13), %s1026_s14, 128, %s1024_s15, %s443_s8   ;;  %v615_v33 = vpop.f32.mrf.mxu0 }
 0x24f PF: > { %s469_s11 = sand.u32 1, %s821_s18   ;;  %p1093_p8 = scmp.ne.s32.totalorder %s1084_s29, 0 }
 0x250   : > { %p1094_p10 = scmp.ge.s32.totalorder %s841_s23, 2  ;;  %s470_s12 = scalar_lea.sflag [#allocation5], %s469_s11 }
 0x252   : > { %p633_p0 = pnand %p1094_p10, %p1093_p8 }
 0x254   : > { %p634_p2 = pneg %p633_p0 }
 0x256   : > { %816 = dma.done.wait (%p634_p2), %s470_s12, 128  }
 0x257   : > { %818 = vsyncadd (%p634_p2), %s470_s12, 4294967168  ;;  %s22_s23 = sadd.s32 1, %s841_s23   ;;  %s1095_s17 = sld [smem:[#allocation12_spill]] }
 0x258   : > { %p19_p3 = scmp.ge.s32.totalorder %s22_s23, 4   ;;  %s1096_s18 = smov %s825_s19 }
 0x259   : > { %s1097_s19 = smov %s829_s20  ;;  %s1098_s20 = smov %s976_s7 }
 0x25a   : > { %s1099_s21 = smov %s837_s22  ;;  %21 = sbr.rel (!%p19_p3) target bundleno = 9 (0x9), region = 97 }
 0x25d   : > { %s1100_s22 = smov %s1095_s17 }
 0x25f   :  { %475 = vsyncpa [#allocation4], 1 }
 0x260   :  { %477 = vsyncpa [#allocation4 + $0x1], 1 }
 0x261   :  { %478 = vsyncpa [#allocation7], 1 }
 0x262   :  { %479 = vsyncpa [#allocation5], 1 }
 0x263   :  { %481 = vsyncpa [#allocation5 + $0x1], 1 }

</bundles_post_ra>
